<compile_context>
chip_gen: v5e
topology: v5e:2x2
jax: 0.10.0
libtpu: 0.0.40
codegen_flags: <defaults>
</compile_context>

<pallas_src>
import math
from functools import partial

import jax
import jax.numpy as jnp
from jax.experimental import pallas as pl
from jax.experimental.pallas import tpu as pltpu


def _swin_attn_kernel(x_ref, wqkv_ref, bqkv_ref, wo_ref, bo_ref,
                      gamma_ref, beta_ref, bias_ref, o_ref,
                      *, num_heads, ln_eps, tau, v_threshold):
    """W_TILE windows stacked on the sublane axis: block-diagonal MHA (mask is
    a precomputed additive bias), residual + LayerNorm + single-step LIF."""
    x = x_ref[...]                                 # (M, E) f32, M = W_TILE*N
    M, E = x.shape
    hd = E // num_heads

    # fused QKV projection; 1/sqrt(hd) already folded into the Q columns
    qkv = jnp.dot(x.astype(jnp.bfloat16), wqkv_ref[...],
                  preferred_element_type=jnp.float32) + bqkv_ref[...]
    qkv = qkv.astype(jnp.bfloat16)                 # (M, 3E)

    bias = bias_ref[...]                           # (M, M) f32: 0 / -1e9
    wo = wo_ref[...]                               # (E, E) bf16

    attn = None
    for h in range(num_heads):
        qh = qkv[:, h * hd:(h + 1) * hd]
        kh = qkv[:, E + h * hd:E + (h + 1) * hd]
        vh = qkv[:, 2 * E + h * hd:2 * E + (h + 1) * hd]
        s = jnp.einsum('qd,kd->qk', qh, kh,
                       preferred_element_type=jnp.float32) + bias
        s = s - jnp.max(s, axis=-1, keepdims=True)
        p = jnp.exp(s)
        p = p * pl.reciprocal(jnp.sum(p, axis=-1, keepdims=True), approx=True)
        oh = jnp.dot(p.astype(jnp.bfloat16), vh,
                     preferred_element_type=jnp.float32)
        # accumulate through this head's Wo slice: avoids the lane-relayout
        # concat of narrow head outputs (the MXU is idle at K=hd anyway).
        contrib = jnp.dot(oh.astype(jnp.bfloat16), wo[h * hd:(h + 1) * hd, :],
                          preferred_element_type=jnp.float32)
        attn = contrib if attn is None else attn + contrib
    attn = attn + bo_ref[...]

    # residual + LayerNorm (f32)
    y = attn + x
    mean = jnp.mean(y, axis=-1, keepdims=True)
    var = jnp.mean(jnp.square(y - mean), axis=-1, keepdims=True)
    normed = (y - mean) * jax.lax.rsqrt(var + ln_eps) * gamma_ref[...] \
             + beta_ref[...]

    # LIF neuron (spikingjelly defaults), single step from reset: v = x/tau
    # TODO(synk): no persistent membrane state across calls (stateless step).
    v_mem = normed * (1.0 / tau)
    # TODO(synk): C(=32)-lane-wide store is a masked partial vst on v5e; a
    # 4-tokens-per-row repack would need an in-kernel relayout, skipped here.
    o_ref[...] = (v_mem >= v_threshold).astype(o_ref.dtype)


def _pick_w_tile(num_windows, tokens_per_window, channels, *,
                 target_rows=128, min_steps=4, vmem_budget=24 << 20):
    """Windows per grid step.  Constraints:
      - tile rows (w*N) sublane-aligned (%8) unless the tile is the full array
        (fixes the previous mis-alignment fallback hazard),
      - rows capped at ~128 so the block-diagonal (M, M) softmax carries no
        vreg-level redundancy at small N,
      - >= min_steps grid steps so both v7x TensorCores get work and the
        token-slab DMA overlaps compute,
      - conservative VMEM budget (v7x: 64 MiB physical, 32 MiB scoped default).
    """
    N, C = tokens_per_window, channels

    def est_bytes(w):
        m = w * N
        io = 2 * (2 * m * C * 4 + m * C * 2)          # double-buffered slabs
        mask = 2 * m * m * 4                          # bias block
        consts = 2 * ((C * 3 * C + C * C) * 2 + 8 * C * 4)
        live = m * 3 * C * 4 + 3 * m * m * 4 + 4 * m * C * 4
        return io + mask + consts + live

    divisors = [d for d in range(1, num_windows + 1) if num_windows % d == 0]
    aligned = [d for d in divisors
               if (d * N) % 8 == 0 or d == num_windows]

    for need_steps in (min_steps, 2, 1):
        cands = [d for d in aligned
                 if d * N <= target_rows
                 and num_windows // d >= need_steps
                 and est_bytes(d) <= vmem_budget]
        if cands:
            return max(cands)
    return min(aligned)


def spiking_shifted_window_attention_3d(x, params, *, window_size, shift_size,
                                        num_heads):
    B, C, D, H, W = x.shape
    wd, wh, ww = window_size
    sd, sh, sw = shift_size
    assert D % wd == 0 and H % wh == 0 and W % ww == 0, \
        "input size must be divisible by window size"
    do_shift = any(s > 0 for s in shift_size)
    if do_shift:
        x = jnp.roll(x, shift=(-sd, -sh, -sw), axis=(2, 3, 4))

    nD, nH, nW = D // wd, H // wh, W // ww
    N = wd * wh * ww
    NW = B * nD * nH * nW
    M_total = NW * N

    # window partition straight to a lane-dense (tokens, channels) 2-D slab.
    # TODO(synk): this permute (and the roll) still round-trips HBM in XLA;
    # folding it into the pallas_call needs a channels-last multi-axis grid
    # plus an in-kernel (C, N)->(N, C) transpose, skipped here.
    xw = x.reshape(B, C, nD, wd, nH, wh, nW, ww)
    xw = xw.transpose(0, 2, 4, 6, 3, 5, 7, 1).reshape(M_total, C)

    wq, wk, wv, bq, bk, bv, wo, bo, gamma, beta = params
    hd = C // num_heads
    scale = 1.0 / math.sqrt(hd)
    # fold the 1/sqrt(hd) attention scale into the Q projection (free here,
    # removes heads*M^2 VPU multiplies per grid step inside the kernel)
    wqkv = jnp.concatenate([wq * scale, wk, wv], axis=1).astype(jnp.bfloat16)
    bqkv = jnp.concatenate([bq * scale, bk, bv], axis=1)        # (1, 3C) f32
    wo_bf = wo.astype(jnp.bfloat16)

    w_tile = _pick_w_tile(NW, N, C)
    tile_m = w_tile * N
    grid = (NW // w_tile,)

    # block-diagonal additive attention bias, built ONCE (identical for every
    # grid step) and passed as a grid-invariant block
    win_id = jnp.arange(tile_m, dtype=jnp.int32) // N
    attn_bias = jnp.where(win_id[:, None] == win_id[None, :],
                          0.0, -1e9).astype(jnp.float32)

    kernel = partial(_swin_attn_kernel, num_heads=num_heads, ln_eps=1e-5,
                     tau=2.0, v_threshold=1.0)

    def _full(shape):
        return pl.BlockSpec(shape, lambda i: (0, 0))

    out = pl.pallas_call(
        kernel,
        out_shape=jax.ShapeDtypeStruct((M_total, C), jnp.bfloat16),
        grid_spec=pltpu.PrefetchScalarGridSpec(
            num_scalar_prefetch=0,
            grid=grid,
            in_specs=[
                pl.BlockSpec((tile_m, C), lambda i: (i, 0)),   # token slab
                _full((C, 3 * C)), _full((1, 3 * C)),          # Wqkv, bqkv
                _full((C, C)), _full((1, C)),                  # Wo, bo
                _full((1, C)), _full((1, C)),                  # gamma, beta
                _full((tile_m, tile_m)),                       # block-diag bias
            ],
            out_specs=pl.BlockSpec((tile_m, C), lambda i: (i, 0)),
        ),
        compiler_params=pltpu.CompilerParams(
            dimension_semantics=("parallel",),
            vmem_limit_bytes=32 * 1024 * 1024),
    )(xw, wqkv, bqkv, wo_bf, bo, gamma, beta, attn_bias)

    # reverse window partition (done in bf16 -> half the HBM writeback)
    y = out.reshape(B, nD, nH, nW, wd, wh, ww, C)
    y = y.transpose(0, 7, 1, 4, 2, 5, 3, 6).reshape(B, C, D, H, W)
    if do_shift:
        y = jnp.roll(y, shift=(sd, sh, sw), axis=(2, 3, 4))
    return y.astype(jnp.float32)


if __name__ == "__main__":
    embed_dim, num_heads = 32, 4
    window_size = (2, 2, 2)
    shift_size = tuple(ws // 2 for ws in window_size)   # (1, 1, 1)
    B, C, D, H, W = 2, embed_dim, 4, 4, 4

    key = jax.random.PRNGKey(0)
    keys = jax.random.split(key, 8)
    x = jax.random.normal(keys[0], (B, C, D, H, W), jnp.float32)

    # Deterministic synthetic parameters (shapes implied by nn.MultiheadAttention
    # in_proj (3E,E)+(3E,), out_proj (E,E)+(E,), LayerNorm (E,)+(E,)); the
    # projection matrices here are stored pre-transposed as (C, C).
    s = 1.0 / math.sqrt(embed_dim)
    wq = jax.random.normal(keys[1], (C, C), jnp.float32) * s
    wk = jax.random.normal(keys[2], (C, C), jnp.float32) * s
    wv = jax.random.normal(keys[3], (C, C), jnp.float32) * s
    wo = jax.random.normal(keys[4], (C, C), jnp.float32) * s
    bq = jax.random.normal(keys[5], (1, C), jnp.float32) * 0.01
    bk = jnp.zeros((1, C), jnp.float32)
    bv = jax.random.normal(keys[6], (1, C), jnp.float32) * 0.01
    bo = jax.random.normal(keys[7], (1, C), jnp.float32) * 0.01
    gamma = jnp.ones((1, C), jnp.float32)
    beta = jnp.zeros((1, C), jnp.float32)

    params = (wq, wk, wv, bq, bk, bv, wo, bo, gamma, beta)

    y = spiking_shifted_window_attention_3d(
        x, params, window_size=window_size, shift_size=shift_size,
        num_heads=num_heads)
    jax.block_until_ready(y)
    assert y.shape == (B, C, D, H, W)
    # spikes must be exactly 0 or 1
    assert bool(jnp.all((y == 0.0) | (y == 1.0)))
    print("KERNEL_OK")
</pallas_src>

<mosaic_0001>
module attributes {stable_mosaic.version = 11 : i64} {
  func.func @_swin_attn_kernel(%arg0: i32, %arg1: memref<32x32xf32, #tpu.memory_space<vmem>>, %arg2: memref<32x96xbf16, #tpu.memory_space<vmem>>, %arg3: memref<1x96xf32, #tpu.memory_space<vmem>>, %arg4: memref<32x32xbf16, #tpu.memory_space<vmem>>, %arg5: memref<1x32xf32, #tpu.memory_space<vmem>>, %arg6: memref<1x32xf32, #tpu.memory_space<vmem>>, %arg7: memref<1x32xf32, #tpu.memory_space<vmem>>, %arg8: memref<32x32xf32, #tpu.memory_space<vmem>>, %arg9: memref<32x32xbf16, #tpu.memory_space<vmem>>) attributes {dimension_semantics = [#tpu.dimension_semantics<parallel>], iteration_bounds = array<i64: 4>, scalar_prefetch = 0 : i64, scratch_operands = 0 : i64, tpu.core_type = #tpu.core_type<tc>, window_params = [{transform_indices = @transform_0, window_bounds = array<i64: 32, 32>}, {pipeline_mode = #tpu.pipeline_mode<synchronous>, transform_indices = @transform_1, window_bounds = array<i64: 32, 96>}, {pipeline_mode = #tpu.pipeline_mode<synchronous>, transform_indices = @transform_2, window_bounds = array<i64: 1, 96>}, {pipeline_mode = #tpu.pipeline_mode<synchronous>, transform_indices = @transform_3, window_bounds = array<i64: 32, 32>}, {pipeline_mode = #tpu.pipeline_mode<synchronous>, transform_indices = @transform_4, window_bounds = array<i64: 1, 32>}, {pipeline_mode = #tpu.pipeline_mode<synchronous>, transform_indices = @transform_5, window_bounds = array<i64: 1, 32>}, {pipeline_mode = #tpu.pipeline_mode<synchronous>, transform_indices = @transform_6, window_bounds = array<i64: 1, 32>}, {pipeline_mode = #tpu.pipeline_mode<synchronous>, transform_indices = @transform_7, window_bounds = array<i64: 32, 32>}, {transform_indices = @transform_8, window_bounds = array<i64: 32, 32>}]} {
    %c0 = arith.constant 0 : index
    %c0_0 = arith.constant 0 : index
    %0 = vector.load %arg1[%c0, %c0_0] : memref<32x32xf32, #tpu.memory_space<vmem>>, vector<32x32xf32>
    %1 = arith.truncf %0 : vector<32x32xf32> to vector<32x32xbf16>
    %c0_1 = arith.constant 0 : index
    %c0_2 = arith.constant 0 : index
    %2 = vector.load %arg2[%c0_1, %c0_2] : memref<32x96xbf16, #tpu.memory_space<vmem>>, vector<32x96xbf16>
    %cst = arith.constant dense<0.000000e+00> : vector<32x96xf32>
    %3 = tpu.matmul %1, %2, %cst {dimension_numbers = #tpu.dot_dimension_numbers<[1], [0], [0], [1], [0, 0, 1, 1], [], []>} : vector<32x32xbf16>, vector<32x96xbf16>, vector<32x96xf32> -> vector<32x96xf32>
    %c0_3 = arith.constant 0 : index
    %c0_4 = arith.constant 0 : index
    %4 = vector.load %arg3[%c0_3, %c0_4] : memref<1x96xf32, #tpu.memory_space<vmem>>, vector<1x96xf32>
    %5 = vector.broadcast %4 : vector<1x96xf32> to vector<32x96xf32>
    %6 = arith.addf %3, %5 : vector<32x96xf32>
    %7 = arith.truncf %6 : vector<32x96xf32> to vector<32x96xbf16>
    %c0_5 = arith.constant 0 : index
    %c0_6 = arith.constant 0 : index
    %8 = vector.load %arg8[%c0_5, %c0_6] : memref<32x32xf32, #tpu.memory_space<vmem>>, vector<32x32xf32>
    %c0_7 = arith.constant 0 : index
    %c0_8 = arith.constant 0 : index
    %9 = vector.load %arg4[%c0_7, %c0_8] : memref<32x32xbf16, #tpu.memory_space<vmem>>, vector<32x32xbf16>
    %10 = vector.extract_strided_slice %7 {offsets = [0, 0], sizes = [32, 8], strides = [1, 1]} : vector<32x96xbf16> to vector<32x8xbf16>
    %11 = vector.extract_strided_slice %7 {offsets = [0, 32], sizes = [32, 8], strides = [1, 1]} : vector<32x96xbf16> to vector<32x8xbf16>
    %12 = vector.extract_strided_slice %7 {offsets = [0, 64], sizes = [32, 8], strides = [1, 1]} : vector<32x96xbf16> to vector<32x8xbf16>
    "tpu.trace_start"() <{level = 10 : i32, message = "qd,kd->qk"}> : () -> ()
    %cst_9 = arith.constant dense<0.000000e+00> : vector<32x32xf32>
    %13 = tpu.matmul %10, %11, %cst_9 {dimension_numbers = #tpu.dot_dimension_numbers<[1], [1], [0], [0], [0, 0, 1, 0], [], []>} : vector<32x8xbf16>, vector<32x8xbf16>, vector<32x32xf32> -> vector<32x32xf32>
    "tpu.trace_stop"() : () -> ()
    %14 = arith.addf %13, %8 : vector<32x32xf32>
    %cst_10 = arith.constant dense<0xFF800000> : vector<32xf32>
    %15 = vector.multi_reduction <maximumf>, %14, %cst_10 [1] : vector<32x32xf32> to vector<32xf32>
    %16 = vector.shape_cast %15 : vector<32xf32> to vector<32x1xf32>
    %17 = vector.broadcast %16 : vector<32x1xf32> to vector<32x32xf32>
    %18 = arith.subf %14, %17 : vector<32x32xf32>
    %19 = math.exp %18 : vector<32x32xf32>
    %cst_11 = arith.constant dense<0.000000e+00> : vector<32xf32>
    %20 = vector.multi_reduction <add>, %19, %cst_11 [1] : vector<32x32xf32> to vector<32xf32>
    %21 = vector.shape_cast %20 : vector<32xf32> to vector<32x1xf32>
    %22 = tpu.reciprocal %21 {approx = true} : vector<32x1xf32> -> vector<32x1xf32>
    %23 = vector.broadcast %22 : vector<32x1xf32> to vector<32x32xf32>
    %24 = arith.mulf %19, %23 : vector<32x32xf32>
    %25 = arith.truncf %24 : vector<32x32xf32> to vector<32x32xbf16>
    %cst_12 = arith.constant dense<0.000000e+00> : vector<32x8xf32>
    %26 = tpu.matmul %25, %12, %cst_12 {dimension_numbers = #tpu.dot_dimension_numbers<[1], [0], [0], [1], [0, 0, 1, 1], [], []>} : vector<32x32xbf16>, vector<32x8xbf16>, vector<32x8xf32> -> vector<32x8xf32>
    %27 = arith.truncf %26 : vector<32x8xf32> to vector<32x8xbf16>
    %28 = vector.extract_strided_slice %9 {offsets = [0, 0], sizes = [8, 32], strides = [1, 1]} : vector<32x32xbf16> to vector<8x32xbf16>
    %cst_13 = arith.constant dense<0.000000e+00> : vector<32x32xf32>
    %29 = tpu.matmul %27, %28, %cst_13 {dimension_numbers = #tpu.dot_dimension_numbers<[1], [0], [0], [1], [0, 0, 1, 1], [], []>} : vector<32x8xbf16>, vector<8x32xbf16>, vector<32x32xf32> -> vector<32x32xf32>
    %30 = vector.extract_strided_slice %7 {offsets = [0, 8], sizes = [32, 8], strides = [1, 1]} : vector<32x96xbf16> to vector<32x8xbf16>
    %31 = vector.extract_strided_slice %7 {offsets = [0, 40], sizes = [32, 8], strides = [1, 1]} : vector<32x96xbf16> to vector<32x8xbf16>
    %32 = vector.extract_strided_slice %7 {offsets = [0, 72], sizes = [32, 8], strides = [1, 1]} : vector<32x96xbf16> to vector<32x8xbf16>
    "tpu.trace_start"() <{level = 10 : i32, message = "qd,kd->qk"}> : () -> ()
    %cst_14 = arith.constant dense<0.000000e+00> : vector<32x32xf32>
    %33 = tpu.matmul %30, %31, %cst_14 {dimension_numbers = #tpu.dot_dimension_numbers<[1], [1], [0], [0], [0, 0, 1, 0], [], []>} : vector<32x8xbf16>, vector<32x8xbf16>, vector<32x32xf32> -> vector<32x32xf32>
    "tpu.trace_stop"() : () -> ()
    %34 = arith.addf %33, %8 : vector<32x32xf32>
    %cst_15 = arith.constant dense<0xFF800000> : vector<32xf32>
    %35 = vector.multi_reduction <maximumf>, %34, %cst_15 [1] : vector<32x32xf32> to vector<32xf32>
    %36 = vector.shape_cast %35 : vector<32xf32> to vector<32x1xf32>
    %37 = vector.broadcast %36 : vector<32x1xf32> to vector<32x32xf32>
    %38 = arith.subf %34, %37 : vector<32x32xf32>
    %39 = math.exp %38 : vector<32x32xf32>
    %cst_16 = arith.constant dense<0.000000e+00> : vector<32xf32>
    %40 = vector.multi_reduction <add>, %39, %cst_16 [1] : vector<32x32xf32> to vector<32xf32>
    %41 = vector.shape_cast %40 : vector<32xf32> to vector<32x1xf32>
    %42 = tpu.reciprocal %41 {approx = true} : vector<32x1xf32> -> vector<32x1xf32>
    %43 = vector.broadcast %42 : vector<32x1xf32> to vector<32x32xf32>
    %44 = arith.mulf %39, %43 : vector<32x32xf32>
    %45 = arith.truncf %44 : vector<32x32xf32> to vector<32x32xbf16>
    %cst_17 = arith.constant dense<0.000000e+00> : vector<32x8xf32>
    %46 = tpu.matmul %45, %32, %cst_17 {dimension_numbers = #tpu.dot_dimension_numbers<[1], [0], [0], [1], [0, 0, 1, 1], [], []>} : vector<32x32xbf16>, vector<32x8xbf16>, vector<32x8xf32> -> vector<32x8xf32>
    %47 = arith.truncf %46 : vector<32x8xf32> to vector<32x8xbf16>
    %48 = vector.extract_strided_slice %9 {offsets = [8, 0], sizes = [8, 32], strides = [1, 1]} : vector<32x32xbf16> to vector<8x32xbf16>
    %cst_18 = arith.constant dense<0.000000e+00> : vector<32x32xf32>
    %49 = tpu.matmul %47, %48, %cst_18 {dimension_numbers = #tpu.dot_dimension_numbers<[1], [0], [0], [1], [0, 0, 1, 1], [], []>} : vector<32x8xbf16>, vector<8x32xbf16>, vector<32x32xf32> -> vector<32x32xf32>
    %50 = arith.addf %29, %49 : vector<32x32xf32>
    %51 = vector.extract_strided_slice %7 {offsets = [0, 16], sizes = [32, 8], strides = [1, 1]} : vector<32x96xbf16> to vector<32x8xbf16>
    %52 = vector.extract_strided_slice %7 {offsets = [0, 48], sizes = [32, 8], strides = [1, 1]} : vector<32x96xbf16> to vector<32x8xbf16>
    %53 = vector.extract_strided_slice %7 {offsets = [0, 80], sizes = [32, 8], strides = [1, 1]} : vector<32x96xbf16> to vector<32x8xbf16>
    "tpu.trace_start"() <{level = 10 : i32, message = "qd,kd->qk"}> : () -> ()
    %cst_19 = arith.constant dense<0.000000e+00> : vector<32x32xf32>
    %54 = tpu.matmul %51, %52, %cst_19 {dimension_numbers = #tpu.dot_dimension_numbers<[1], [1], [0], [0], [0, 0, 1, 0], [], []>} : vector<32x8xbf16>, vector<32x8xbf16>, vector<32x32xf32> -> vector<32x32xf32>
    "tpu.trace_stop"() : () -> ()
    %55 = arith.addf %54, %8 : vector<32x32xf32>
    %cst_20 = arith.constant dense<0xFF800000> : vector<32xf32>
    %56 = vector.multi_reduction <maximumf>, %55, %cst_20 [1] : vector<32x32xf32> to vector<32xf32>
    %57 = vector.shape_cast %56 : vector<32xf32> to vector<32x1xf32>
    %58 = vector.broadcast %57 : vector<32x1xf32> to vector<32x32xf32>
    %59 = arith.subf %55, %58 : vector<32x32xf32>
    %60 = math.exp %59 : vector<32x32xf32>
    %cst_21 = arith.constant dense<0.000000e+00> : vector<32xf32>
    %61 = vector.multi_reduction <add>, %60, %cst_21 [1] : vector<32x32xf32> to vector<32xf32>
    %62 = vector.shape_cast %61 : vector<32xf32> to vector<32x1xf32>
    %63 = tpu.reciprocal %62 {approx = true} : vector<32x1xf32> -> vector<32x1xf32>
    %64 = vector.broadcast %63 : vector<32x1xf32> to vector<32x32xf32>
    %65 = arith.mulf %60, %64 : vector<32x32xf32>
    %66 = arith.truncf %65 : vector<32x32xf32> to vector<32x32xbf16>
    %cst_22 = arith.constant dense<0.000000e+00> : vector<32x8xf32>
    %67 = tpu.matmul %66, %53, %cst_22 {dimension_numbers = #tpu.dot_dimension_numbers<[1], [0], [0], [1], [0, 0, 1, 1], [], []>} : vector<32x32xbf16>, vector<32x8xbf16>, vector<32x8xf32> -> vector<32x8xf32>
    %68 = arith.truncf %67 : vector<32x8xf32> to vector<32x8xbf16>
    %69 = vector.extract_strided_slice %9 {offsets = [16, 0], sizes = [8, 32], strides = [1, 1]} : vector<32x32xbf16> to vector<8x32xbf16>
    %cst_23 = arith.constant dense<0.000000e+00> : vector<32x32xf32>
    %70 = tpu.matmul %68, %69, %cst_23 {dimension_numbers = #tpu.dot_dimension_numbers<[1], [0], [0], [1], [0, 0, 1, 1], [], []>} : vector<32x8xbf16>, vector<8x32xbf16>, vector<32x32xf32> -> vector<32x32xf32>
    %71 = arith.addf %50, %70 : vector<32x32xf32>
    %72 = vector.extract_strided_slice %7 {offsets = [0, 24], sizes = [32, 8], strides = [1, 1]} : vector<32x96xbf16> to vector<32x8xbf16>
    %73 = vector.extract_strided_slice %7 {offsets = [0, 56], sizes = [32, 8], strides = [1, 1]} : vector<32x96xbf16> to vector<32x8xbf16>
    %74 = vector.extract_strided_slice %7 {offsets = [0, 88], sizes = [32, 8], strides = [1, 1]} : vector<32x96xbf16> to vector<32x8xbf16>
    "tpu.trace_start"() <{level = 10 : i32, message = "qd,kd->qk"}> : () -> ()
    %cst_24 = arith.constant dense<0.000000e+00> : vector<32x32xf32>
    %75 = tpu.matmul %72, %73, %cst_24 {dimension_numbers = #tpu.dot_dimension_numbers<[1], [1], [0], [0], [0, 0, 1, 0], [], []>} : vector<32x8xbf16>, vector<32x8xbf16>, vector<32x32xf32> -> vector<32x32xf32>
    "tpu.trace_stop"() : () -> ()
    %76 = arith.addf %75, %8 : vector<32x32xf32>
    %cst_25 = arith.constant dense<0xFF800000> : vector<32xf32>
    %77 = vector.multi_reduction <maximumf>, %76, %cst_25 [1] : vector<32x32xf32> to vector<32xf32>
    %78 = vector.shape_cast %77 : vector<32xf32> to vector<32x1xf32>
    %79 = vector.broadcast %78 : vector<32x1xf32> to vector<32x32xf32>
    %80 = arith.subf %76, %79 : vector<32x32xf32>
    %81 = math.exp %80 : vector<32x32xf32>
    %cst_26 = arith.constant dense<0.000000e+00> : vector<32xf32>
    %82 = vector.multi_reduction <add>, %81, %cst_26 [1] : vector<32x32xf32> to vector<32xf32>
    %83 = vector.shape_cast %82 : vector<32xf32> to vector<32x1xf32>
    %84 = tpu.reciprocal %83 {approx = true} : vector<32x1xf32> -> vector<32x1xf32>
    %85 = vector.broadcast %84 : vector<32x1xf32> to vector<32x32xf32>
    %86 = arith.mulf %81, %85 : vector<32x32xf32>
    %87 = arith.truncf %86 : vector<32x32xf32> to vector<32x32xbf16>
    %cst_27 = arith.constant dense<0.000000e+00> : vector<32x8xf32>
    %88 = tpu.matmul %87, %74, %cst_27 {dimension_numbers = #tpu.dot_dimension_numbers<[1], [0], [0], [1], [0, 0, 1, 1], [], []>} : vector<32x32xbf16>, vector<32x8xbf16>, vector<32x8xf32> -> vector<32x8xf32>
    %89 = arith.truncf %88 : vector<32x8xf32> to vector<32x8xbf16>
    %90 = vector.extract_strided_slice %9 {offsets = [24, 0], sizes = [8, 32], strides = [1, 1]} : vector<32x32xbf16> to vector<8x32xbf16>
    %cst_28 = arith.constant dense<0.000000e+00> : vector<32x32xf32>
    %91 = tpu.matmul %89, %90, %cst_28 {dimension_numbers = #tpu.dot_dimension_numbers<[1], [0], [0], [1], [0, 0, 1, 1], [], []>} : vector<32x8xbf16>, vector<8x32xbf16>, vector<32x32xf32> -> vector<32x32xf32>
    %92 = arith.addf %71, %91 : vector<32x32xf32>
    %c0_29 = arith.constant 0 : index
    %c0_30 = arith.constant 0 : index
    %93 = vector.load %arg5[%c0_29, %c0_30] : memref<1x32xf32, #tpu.memory_space<vmem>>, vector<1x32xf32>
    %94 = vector.broadcast %93 : vector<1x32xf32> to vector<32x32xf32>
    %95 = arith.addf %92, %94 : vector<32x32xf32>
    %96 = arith.addf %95, %0 : vector<32x32xf32>
    %cst_31 = arith.constant dense<0.000000e+00> : vector<32xf32>
    %97 = vector.multi_reduction <add>, %96, %cst_31 [1] : vector<32x32xf32> to vector<32xf32>
    %98 = vector.shape_cast %97 : vector<32xf32> to vector<32x1xf32>
    %cst_32 = arith.constant 3.200000e+01 : f32
    %99 = vector.broadcast %cst_32 : f32 to vector<32x1xf32>
    %100 = arith.divf %98, %99 : vector<32x1xf32>
    %101 = vector.broadcast %100 : vector<32x1xf32> to vector<32x32xf32>
    %102 = arith.subf %96, %101 : vector<32x32xf32>
    %103 = arith.mulf %102, %102 : vector<32x32xf32>
    %cst_33 = arith.constant dense<0.000000e+00> : vector<32xf32>
    %104 = vector.multi_reduction <add>, %103, %cst_33 [1] : vector<32x32xf32> to vector<32xf32>
    %105 = vector.shape_cast %104 : vector<32xf32> to vector<32x1xf32>
    %cst_34 = arith.constant 3.200000e+01 : f32
    %106 = vector.broadcast %cst_34 : f32 to vector<32x1xf32>
    %107 = arith.divf %105, %106 : vector<32x1xf32>
    %108 = vector.broadcast %100 : vector<32x1xf32> to vector<32x32xf32>
    %109 = arith.subf %96, %108 : vector<32x32xf32>
    %cst_35 = arith.constant 9.99999974E-6 : f32
    %110 = vector.broadcast %cst_35 : f32 to vector<32x1xf32>
    %111 = arith.addf %107, %110 : vector<32x1xf32>
    %112 = math.rsqrt %111 : vector<32x1xf32>
    %113 = vector.broadcast %112 : vector<32x1xf32> to vector<32x32xf32>
    %114 = arith.mulf %109, %113 : vector<32x32xf32>
    %c0_36 = arith.constant 0 : index
    %c0_37 = arith.constant 0 : index
    %115 = vector.load %arg6[%c0_36, %c0_37] : memref<1x32xf32, #tpu.memory_space<vmem>>, vector<1x32xf32>
    %116 = vector.broadcast %115 : vector<1x32xf32> to vector<32x32xf32>
    %117 = arith.mulf %114, %116 : vector<32x32xf32>
    %c0_38 = arith.constant 0 : index
    %c0_39 = arith.constant 0 : index
    %118 = vector.load %arg7[%c0_38, %c0_39] : memref<1x32xf32, #tpu.memory_space<vmem>>, vector<1x32xf32>
    %119 = vector.broadcast %118 : vector<1x32xf32> to vector<32x32xf32>
    %120 = arith.addf %117, %119 : vector<32x32xf32>
    %cst_40 = arith.constant 5.000000e-01 : f32
    %121 = vector.broadcast %cst_40 : f32 to vector<32x32xf32>
    %122 = arith.mulf %120, %121 : vector<32x32xf32>
    %cst_41 = arith.constant 1.000000e+00 : f32
    %123 = vector.broadcast %cst_41 : f32 to vector<32x32xf32>
    %124 = arith.cmpf oge, %122, %123 : vector<32x32xf32>
    %125 = arith.extui %124 : vector<32x32xi1> to vector<32x32xi32>
    %126 = arith.sitofp %125 : vector<32x32xi32> to vector<32x32xf32>
    %127 = arith.truncf %126 : vector<32x32xf32> to vector<32x32xbf16>
    %c0_42 = arith.constant 0 : index
    %c0_43 = arith.constant 0 : index
    %128 = vector.load %arg9[%c0_42, %c0_43] : memref<32x32xbf16, #tpu.memory_space<vmem>>, vector<32x32xbf16>
    tpu.vector_store %arg9[%c0_42, %c0_43], %127 {strides = array<i32>} : memref<32x32xbf16, #tpu.memory_space<vmem>>, vector<32x32xbf16>,
    return
  }
  func.func @transform_0(%arg0: i32) -> (i32, i32) {
    %c0_i32 = arith.constant 0 : i32
    %c0_i32_0 = arith.constant 0 : i32
    return %arg0, %c0_i32 : i32, i32
  }
  func.func @transform_1(%arg0: i32) -> (i32, i32) {
    %c0_i32 = arith.constant 0 : i32
    %c0_i32_0 = arith.constant 0 : i32
    %c0_i32_1 = arith.constant 0 : i32
    return %c0_i32, %c0_i32_0 : i32, i32
  }
  func.func @transform_2(%arg0: i32) -> (i32, i32) {
    %c0_i32 = arith.constant 0 : i32
    %c0_i32_0 = arith.constant 0 : i32
    %c0_i32_1 = arith.constant 0 : i32
    return %c0_i32, %c0_i32_0 : i32, i32
  }
  func.func @transform_3(%arg0: i32) -> (i32, i32) {
    %c0_i32 = arith.constant 0 : i32
    %c0_i32_0 = arith.constant 0 : i32
    %c0_i32_1 = arith.constant 0 : i32
    return %c0_i32, %c0_i32_0 : i32, i32
  }
  func.func @transform_4(%arg0: i32) -> (i32, i32) {
    %c0_i32 = arith.constant 0 : i32
    %c0_i32_0 = arith.constant 0 : i32
    %c0_i32_1 = arith.constant 0 : i32
    return %c0_i32, %c0_i32_0 : i32, i32
  }
  func.func @transform_5(%arg0: i32) -> (i32, i32) {
    %c0_i32 = arith.constant 0 : i32
    %c0_i32_0 = arith.constant 0 : i32
    %c0_i32_1 = arith.constant 0 : i32
    return %c0_i32, %c0_i32_0 : i32, i32
  }
  func.func @transform_6(%arg0: i32) -> (i32, i32) {
    %c0_i32 = arith.constant 0 : i32
    %c0_i32_0 = arith.constant 0 : i32
    %c0_i32_1 = arith.constant 0 : i32
    return %c0_i32, %c0_i32_0 : i32, i32
  }
  func.func @transform_7(%arg0: i32) -> (i32, i32) {
    %c0_i32 = arith.constant 0 : i32
    %c0_i32_0 = arith.constant 0 : i32
    %c0_i32_1 = arith.constant 0 : i32
    return %c0_i32, %c0_i32_0 : i32, i32
  }
  func.func @transform_8(%arg0: i32) -> (i32, i32) {
    %c0_i32 = arith.constant 0 : i32
    %c0_i32_0 = arith.constant 0 : i32
    return %arg0, %c0_i32 : i32, i32
  }
}

</mosaic_0001>

<bundles_post_ra>
// kernel: tpu_custom_call.1
= control target key start
LH: loop header
LB: loop body
LE: loop exit
PB: predicated region body
PF: predicated region fallthrough
CT: control target
= control target key end

     0   :  { %s1396_s27 = smov 0   ;;  %s1715_s0 = inlined_call_operand.vmem [shape: f32[128,32], index: 0, kind: input, shape index: {}]   ;;  %s1716_s1 = inlined_call_operand.vmem [shape: bf16[32,96], index: 1, kind: input, shape index: {}]   ;;  %s1717_s2 = inlined_call_operand.vmem [shape: f32[1,96], index: 2, kind: input, shape index: {}]   ;;  %s1718_s3 = inlined_call_operand.vmem [shape: bf16[32,32], index: 3, kind: input, shape index: {}]   ;;  %s1719_s4 = inlined_call_operand.vmem [shape: f32[1,32], index: 4, kind: input, shape index: {}]   ;;  %s1720_s5 = inlined_call_operand.vmem [shape: f32[1,32], index: 5, kind: input, shape index: {}]   ;;  %s1721_s6 = inlined_call_operand.vmem [shape: f32[1,32], index: 6, kind: input, shape index: {}]   ;;  %s1722_s7 = inlined_call_operand.vmem [shape: f32[32,32], index: 7, kind: input, shape index: {}]   ;;  %s1723_s8 = inlined_call_operand.vmem [shape: bf16[128,32], index: 8, kind: output, shape index: {}]  }
   0x1 LB: > { %s1178_s28 = sadd.s32 4294967295, %s1336_s27   ;;  %p1182_p0 = scmp.ge.s32.totalorder %s1336_s27, 1  ;;  %s1336_s27 = sphi %s1396_s27, %s18_s27  }
   0x2   : > { %p263_p1 = scmp.lt.s32.totalorder %s1336_s27, 5 }
   0x4   : > { %p264_p2 = pnand %p1182_p0, %p263_p1 }
   0x5   : > { %s1183_s9 = sshll.u32 (!%p264_p2), %s1178_s28, 2  ;;  %s1338_s18 = smov (!%p264_p2), 96  }
   0x6   : > { %267 = sbr.rel (%p264_p2) target bundleno = 1921 (0x781), region = 52  ;;  %p298_p3 = scmp.lt.s32.totalorder (!%p264_p2), %s1183_s9, 15 }
   0x7   : > { %s1339_s28 = smov (!%p264_p2), 64   ;;  %s1340_s29 = smov (!%p264_p2), 88  }
   0x8   : > { %s1341_s30 = smov (!%p264_p2), 120   ;;  %s1342_s10 = smov (!%p264_p2), 80  }
   0x9   : > { %s1343_s11 = smov (!%p264_p2), 112   ;;  %s1345_s13 = smov (!%p264_p2), 104  }
   0xa   : > { %s1346_s16 = smov (!%p264_p2), 56   ;;  %s1347_s17 = smov (!%p264_p2), 48  }
   0xb   : > { %v1228_v0 = vld [vmem:[%s1716_s1 + $0x8] sm:$0xff]  ;;  %v1227_v1 = vld [vmem:[%s1716_s1] sm:$0xff]  ;;  %s1725_s9 = smov (!%p298_p3, %s1183_s9), 15  ;;  %vm336_vm0 = vcmask 261120   ;;  %vm388_vm1 = vcmask 64512   ;;  %v1462_v39 = vld [vmem:[%s1722_s7 + $0x10] sm:$0xff] }
   0xc   : > { %1229 = vmatpush.bf16.msra.mxu2 %v1228_v0  ;;  %349 = vmatpush.bf16.msra.mxu0 %v1228_v0  ;;  %s1184_s12 = sshll.u32 %s1725_s9, 3  ;;  %v1252_v10 = vld [vmem:[%s1717_s2] ss:$0 sm:$0xff]  ;;  %v1455_v35 = vld [vmem:[%s1722_s7 + $0x8] sm:$0xff]  ;;  %v1469_v43 = vld [vmem:[%s1722_s7 + $0x18] sm:$0xff]  ;;  %vm623_vm2 = vcmask 1043456  }
   0xd   : > { %s301_s15 = scalar_lea.vmem %s1715_s0, %s1184_s12  ;;  %v1448_v31 = vld [vmem:[%s1722_s7] sm:$0xff]  ;;  %s1344_s12 = smov 72   ;;  %vm1117_vm11 = vcmask 257024  }
   0xe   : > { %v1416_v2 = vld [vmem:[%s301_s15 + $0x10] sm:$0xff]  ;;  %v1418_v3 = vld [vmem:[%s301_s15 + $0x18] sm:$0xff]  ;;  %v1420_v4 = vld [vmem:[%s301_s15] sm:$0xff] }
   0xf   : > { %v315_v5 = vpack.c.bf16 %v1418_v3, %v1416_v2  ;;  %v1424_v6 = vld [vmem:[%s301_s15 + $0x8] sm:$0xff] }
  0x10   : > { %1230 = vmatpush.bf16.msra.mxu2 %v1227_v1  ;;  %350 = vmatpush.bf16.msra.mxu0 %v1227_v1  ;;  %v314_v7 = vpack.c.bf16 %v1424_v6, %v1420_v4 }
  0x13   : > { %1196 = vmatmul.msk.bf16.vlgmr.msra.gmra.mxu2 %vm336_vm0, %v315_v5  ;;  %1195 = vmatmul.msk.bf16.vlgmr.msra.gmra.mxu0 %vm336_vm0, %v314_v7 }
  0x90   : > { %v352_v8 = vpop.f32.mrf.mxu0 }
  0x91   : > { %v353_v16 = vadd.f32 %v1252_v10, %v352_v8 }
  0x93   : > { %v362_v21 = vpack.c.bf16 %v353_v16, %v353_v16 }
  0x95   : > { %v378_v24 = vunpack.c.l.b16 %v362_v21 }
  0x96   : > { %v357_v9 = vpop.f32.mrf.mxu2 }
  0x97   : > { %v358_v11 = vadd.f32 %v1252_v10, %v357_v9 }
  0x98   : > { %v354_v12 = vpop.f32.mrf.mxu0 }
  0x99   : > { %v364_v14 = vpack.c.bf16 %v358_v11, %v358_v11  ;;  %v355_v17 = vadd.f32 %v1252_v10, %v354_v12 }
  0x9b   : > { %v380_v19 = vunpack.c.l.b16 %v364_v14  ;;  %v363_v22 = vpack.c.bf16 %v355_v17, %v355_v17 }
  0x9d   : > { %v379_v25 = vunpack.c.l.b16 %v363_v22 }
  0x9e   : > { %v359_v13 = vpop.f32.mrf.mxu2 }
  0x9f   : > { %v360_v15 = vadd.f32 %v1252_v10, %v359_v13  ;;  %v1436_v26 = vpack.c.b16 %v379_v25, %v378_v24  ;;  %v370_v10 = vld [vmem:[%s1718_s3] sm:$0xf] }
  0xa0   : > { %v653_v12 = vsel %vm623_vm2, %v370_v10, 0 }
  0xa1   : > { %v365_v18 = vpack.c.bf16 %v360_v15, %v360_v15 }
  0xa3   : > { %v381_v20 = vunpack.c.l.b16 %v365_v18 }
  0xa5   : > { %v1433_v23 = vpack.c.b16 %v381_v20, %v380_v19 }
  0xa7   : > { %386 = vrot.lane.b32.xlu0 %v1433_v23, %s1338_s18 }
  0xaf   : > { %384 = vrot.lane.b32.xlu0 %v1436_v26, %s1338_s18  ;;  %s1348_s18 = smov 40  }
 0x119   : > { %v387_v27 = vpop.permute.xlu0 %386 }
 0x11a   : > { %v399_v28 = vsel %vm388_vm1, %v387_v27, 0 }
 0x11b   : > { %407 = vmatpush.bf16.xpose.msra.mxu1 %v399_v28 }
 0x121   : > { %v385_v29 = vpop.permute.xlu0 %384 }
 0x122   : > { %v396_v30 = vsel %vm388_vm1, %v385_v29, 0 }
 0x123   : > { %408 = vmatpush.bf16.xpose.msra.mxu1 %v396_v30 }
 0x12a   : > { %1197 = vmatmul.msk.bf16.vlgmr.msra.gmra.mxu1 %vm388_vm1, %v1436_v26 }
 0x12b   : > { %662 = vmatpush.bf16.msrb.mxu1 %v653_v12 }
 0x13a   : > { %1198 = vmatmul.msk.bf16.gmra.mxu1 %vm388_vm1, %v1433_v23 }
 0x1a7   : > { %v410_v32 = vpop.f32.mrf.mxu1 }
 0x1a8   : > { %v411_v33 = vadd.f32 %v410_v32, %v1448_v31 }
 0x1aa   : > { %v420_v34 = vsel %vm336_vm0, %v411_v33, -inf }
 0x1ab   : > { %421 = vmax.xlane.f32.xlu1 %v420_v34 }
 0x1af   : > { %v412_v36 = vpop.f32.mrf.mxu1 }
 0x1b0   : > { %v413_v37 = vadd.f32 %v412_v36, %v1455_v35 }
 0x1b2   : > { %v423_v38 = vsel %vm336_vm0, %v413_v37, -inf }
 0x1b3   : > { %424 = vmax.xlane.f32.xlu1 %v423_v38 }
 0x1b7   : > { %v415_v40 = vpop.f32.mrf.mxu1 }
 0x1b8   : > { %v416_v41 = vadd.f32 %v415_v40, %v1462_v39 }
 0x1ba   : > { %v426_v42 = vsel %vm336_vm0, %v416_v41, -inf }
 0x1bb   : > { %427 = vmax.xlane.f32.xlu2 %v426_v42 }
 0x1bf   : > { %v417_v44 = vpop.f32.mrf.mxu1 }
 0x1c0   : > { %v418_v45 = vadd.f32 %v417_v44, %v1469_v43 }
 0x1c2   : > { %v429_v46 = vsel %vm336_vm0, %v418_v45, -inf }
 0x1c3   : > { %430 = vmax.xlane.f32.xlu2 %v429_v46 }
 0x1db   : > { %468 = vrot.lane.b32.xlu2 %v1433_v23, %s1339_s28 }
 0x21e   : > { %v422_v47 = vpop.xlane.xlu1 %421 }
 0x21f   : > { %v432_v48 = vsub.f32 %v411_v33, %v422_v47 }
 0x221   : > { %v436_v49 = vmul.f32 1.442695, %v432_v48 }
 0x223   : > { %1256 = vpow2.f32 %v436_v49 }
 0x226   : > { %v425_v50 = vpop.xlane.xlu1 %424 }
 0x227   : > { %v433_v51 = vsub.f32 %v413_v37, %v425_v50 }
 0x229   : > { %v1257_v52 = vpop.eup %1256  ;;  %v438_v53 = vmul.f32 1.442695, %v433_v51 }
 0x22a   : > { %v444_v54 = vsel %vm336_vm0, %v1257_v52, 0.0 }
 0x22b   : > { %1258 = vpow2.f32 %v438_v53  ;;  %445 = vadd.xlane.f32.xlu0 %v444_v54 }
 0x22e   : > { %v428_v55 = vpop.xlane.xlu2 %427 }
 0x22f   : > { %v434_v56 = vsub.f32 %v416_v41, %v428_v55 }
 0x231   : > { %v1259_v57 = vpop.eup %1258  ;;  %v440_v58 = vmul.f32 1.442695, %v434_v56 }
 0x232   : > { %v447_v59 = vsel %vm336_vm0, %v1259_v57, 0.0 }
 0x233   : > { %1260 = vpow2.f32 %v440_v58  ;;  %448 = vadd.xlane.f32.xlu1 %v447_v59 }
 0x236   : > { %v431_v60 = vpop.xlane.xlu2 %430 }
 0x237   : > { %v435_v0 = vsub.f32 %v418_v45, %v431_v60 }
 0x239   : > { %v1476_v61 = vpop.eup %1260  ;;  %v442_v1 = vmul.f32 1.442695, %v435_v0 }
 0x23a   : > { %v450_v62 = vsel %vm336_vm0, %v1476_v61, 0.0 }
 0x23b   : > { %451 = vadd.xlane.f32.xlu2 %v450_v62  ;;  %1262 = vpow2.f32 %v442_v1 }
 0x23e   : > { %v469_v63 = vpop.permute.xlu2 %468 }
 0x23f   : > { %484 = vmatpush.bf16.msrb.mxu2 %v469_v63  ;;  %505 = vrot.lane.b32.xlu0 %v1433_v23, %s1340_s29 }
 0x241   : > { %v1263_v5 = vpop.eup %1262 }
 0x242   : > { %v453_v7 = vsel %vm336_vm0, %v1263_v5, 0.0 }
 0x247   : > { %503 = vrot.lane.b32.xlu0 %v1436_v26, %s1340_s29 }
 0x24c   : > { %466 = vrot.lane.b32.xlu1 %v1436_v26, %s1339_s28 }
 0x24f   : > { %501 = vrot.lane.b32.xlu0 %v1433_v23, %s1341_s30 }
 0x253   : > { %499 = vrot.lane.b32.xlu2 %v1436_v26, %s1341_s30 }
 0x257   : > { %678 = vrot.lane.b32.xlu0 %v1436_v26, %s1342_s10 }
 0x25b   : > { %674 = vrot.lane.b32.xlu2 %v1436_v26, %s1343_s11 }
 0x25f   : > { %830 = vrot.lane.b32.xlu0 %v1433_v23, %s1344_s12 }
 0x263   : > { %824 = vrot.lane.b32.xlu2 %v1436_v26, %s1345_s13 }
 0x267   : > { %828 = vrot.lane.b32.xlu0 %v1436_v26, %s1344_s12 }
 0x26f   : > { %826 = vrot.lane.b32.xlu0 %v1433_v23, %s1345_s13 }
 0x276   : > { %454 = vadd.xlane.f32.xlu1 %v453_v7 }
 0x28f   : > { %680 = vrot.lane.b32.xlu1 %v1433_v23, %s1342_s10 }
 0x297   : > { %676 = vrot.lane.b32.xlu1 %v1433_v23, %s1343_s11  ;;  %s1186_s11 = sshll.u32 %s1725_s9, 2 }
 0x298   : > { %s1692_s14 = scalar_lea.vmem %s1723_s8, %s1186_s11 }
 0x29e   : > { %v446_v8 = vpop.xlane.xlu0 %445 }
 0x2a6   : > { %v449_v9 = vpop.xlane.xlu1 %448 }
 0x2a7   : > { %1264 = vrcp.f32 %v449_v9 }
 0x2a8   : > { %1266 = vrcp.f32 %v446_v8 }
 0x2ad   : > { %v1265_v15 = vpop.eup %1264 }
 0x2ae   : > { %v452_v14 = vpop.xlane.xlu2 %451  ;;  %v1267_v18 = vpop.eup %1266  ;;  %v461_v19 = vmul.f32 %v1265_v15, %v1259_v57 }
 0x2af   : > { %v460_v20 = vmul.f32 %v1267_v18, %v1257_v52  ;;  %1268 = vrcp.f32 %v452_v14 }
 0x2b1   : > { %v506_v11 = vpop.permute.xlu0 %505  ;;  %v464_v22 = vpack.c.bf16 %v461_v19, %v460_v20 }
 0x2b2   : > { %v517_v13 = vsel %vm388_vm1, %v506_v11, 0 }
 0x2b3   : > { %525 = vmatpush.bf16.xpose.msra.mxu3 %v517_v13 }
 0x2b5   : > { %v1269_v34 = vpop.eup %1268 }
 0x2b6   : > { %v500_v24 = vpop.permute.xlu2 %499  ;;  %v462_v37 = vmul.f32 %v1269_v34, %v1476_v61 }
 0x2b9   : > { %v504_v16 = vpop.permute.xlu0 %503 }
 0x2ba   : > { %v514_v17 = vsel %vm388_vm1, %v504_v16, 0 }
 0x2bb   : > { %526 = vmatpush.bf16.xpose.msra.mxu3 %v514_v17 }
 0x2be   : > { %v467_v21 = vpop.permute.xlu1 %466  ;;  %v675_v45 = vpop.permute.xlu2 %674 }
 0x2bf   : > { %485 = vmatpush.bf16.msrb.mxu2 %v467_v21 }
 0x2c1   : > { %v502_v25 = vpop.permute.xlu0 %501 }
 0x2c2   : > { %1199 = vmatmul.msk.bf16.vlgmr.msrb.gmra.mxu2 %vm336_vm0, %v464_v22  ;;  %1201 = vmatmul.msk.bf16.vlgmr.msra.gmra.mxu3 %vm388_vm1, %v500_v24 }
 0x2c6   : > { %v825_v1 = vpop.permute.xlu2 %824 }
 0x2c9   : > { %v679_v27 = vpop.permute.xlu0 %678 }
 0x2ca   : > { %v689_v44 = vsel %vm388_vm1, %v679_v27, 0 }
 0x2d1   : > { %v831_v28 = vpop.permute.xlu0 %830 }
 0x2d2   : > { %v842_v29 = vsel %vm388_vm1, %v831_v28, 0  ;;  %1202 = vmatmul.msk.bf16.gmra.mxu3 %vm388_vm1, %v502_v25 }
 0x2d3   : > { %850 = vmatpush.bf16.xpose.msra.mxu1 %v842_v29 }
 0x2d9   : > { %v829_v30 = vpop.permute.xlu0 %828 }
 0x2da   : > { %v839_v32 = vsel %vm388_vm1, %v829_v30, 0 }
 0x2db   : > { %851 = vmatpush.bf16.xpose.msra.mxu1 %v839_v32 }
 0x2e1   : > { %v827_v12 = vpop.permute.xlu0 %826 }
 0x2e9   : > { %v455_v33 = vpop.xlane.xlu1 %454 }
 0x2ea   : > { %1270 = vrcp.f32 %v455_v33 }
 0x2f0   : > { %v1271_v36 = vpop.eup %1270 }
 0x2f1   : > { %v463_v38 = vmul.f32 %v1271_v36, %v1263_v5 }
 0x2f3   : > { %v465_v40 = vpack.c.bf16 %v463_v38, %v462_v37 }
 0x2f5   : > { %1200 = vmatmul.msk.bf16.gmra.mxu2 %vm336_vm0, %v465_v40 }
 0x301   : > { %v681_v41 = vpop.permute.xlu1 %680 }
 0x302   : > { %v692_v42 = vsel %vm388_vm1, %v681_v41, 0 }
 0x303   : > { %700 = vmatpush.bf16.xpose.msrb.mxu3 %v692_v42 }
 0x309   : > { %v677_v46 = vpop.permute.xlu1 %676 }
 0x30b   : > { %701 = vmatpush.bf16.xpose.msrb.mxu3 %v689_v44 }
 0x312   : > { %1209 = vmatmul.msk.bf16.vlgmr.msrb.gmra.mxu3 %vm388_vm1, %v675_v45 }
 0x322   : > { %1210 = vmatmul.msk.bf16.gmra.mxu3 %vm388_vm1, %v677_v46 }
 0x345   : > { %v487_v47 = vpop.f32.mrf.mxu2  ;;  %v528_v48 = vpop.f32.mrf.mxu3 }
 0x346   : > { %v529_v49 = vadd.f32 %v528_v48, %v1448_v31 }
 0x348   : > { %v538_v50 = vsel %vm336_vm0, %v529_v49, -inf }
 0x349   : > { %539 = vmax.xlane.f32.xlu2 %v538_v50 }
 0x34d   : > { %v489_v51 = vpop.f32.mrf.mxu2  ;;  %v530_v52 = vpop.f32.mrf.mxu3 }
 0x34e   : > { %v497_v53 = vpack.c.bf16 %v489_v51, %v487_v47  ;;  %v531_v54 = vadd.f32 %v530_v52, %v1455_v35 }
 0x350   : > { %1207 = vmatmul.msk.bf16.vlgmr.msrb.gmra.mxu1 %vm388_vm1, %v497_v53  ;;  %v541_v55 = vsel %vm336_vm0, %v531_v54, -inf }
 0x351   : > { %542 = vmax.xlane.f32.xlu1 %v541_v55 }
 0x355   : > { %v533_v56 = vpop.f32.mrf.mxu3 }
 0x356   : > { %v534_v57 = vadd.f32 %v533_v56, %v1462_v39 }
 0x358   : > { %v544_v58 = vsel %vm336_vm0, %v534_v57, -inf }
 0x359   : > { %545 = vmax.xlane.f32.xlu0 %v544_v58 }
 0x35d   : > { %v535_v59 = vpop.f32.mrf.mxu3 }
 0x35e   : > { %v536_v60 = vadd.f32 %v535_v59, %v1469_v43 }
 0x360   : > { %v547_v61 = vsel %vm336_vm0, %v536_v60, -inf }
 0x361   : > { %548 = vmax.xlane.f32.xlu2 %v547_v61 }
 0x378   : > { %v492_v62 = vpop.f32.mrf.mxu2 }
 0x380   : > { %v494_v63 = vpop.f32.mrf.mxu2 }
 0x381   : > { %v498_v0 = vpack.c.bf16 %v494_v63, %v492_v62 }
 0x383   : > { %1208 = vmatmul.msk.bf16.gmra.mxu1 %vm388_vm1, %v498_v0 }
 0x393   : > { %1215 = vmatmul.msk.bf16.vlgmr.msra.gmra.mxu1 %vm388_vm1, %v825_v1 }
 0x395   : > { %v703_v5 = vpop.f32.mrf.mxu3 }
 0x396   : > { %v704_v7 = vadd.f32 %v703_v5, %v1448_v31 }
 0x398   : > { %v713_v8 = vsel %vm336_vm0, %v704_v7, -inf }
 0x399   : > { %714 = vmax.xlane.f32.xlu1 %v713_v8 }
 0x39d   : > { %v705_v9 = vpop.f32.mrf.mxu3 }
 0x39e   : > { %v706_v10 = vadd.f32 %v705_v9, %v1455_v35 }
 0x3a0   : > { %v716_v11 = vsel %vm336_vm0, %v706_v10, -inf }
 0x3a1   : > { %717 = vmax.xlane.f32.xlu0 %v716_v11 }
 0x3a3   : > { %1216 = vmatmul.msk.bf16.gmra.mxu1 %vm388_vm1, %v827_v12 }
 0x3a5   : > { %v708_v13 = vpop.f32.mrf.mxu3 }
 0x3a6   : > { %v1528_v14 = vadd.f32 %v708_v13, %v1462_v39 }
 0x3a8   : > { %v719_v15 = vsel %vm336_vm0, %v1528_v14, -inf }
 0x3a9   : > { %720 = vmax.xlane.f32.xlu0 %v719_v15 }
 0x3ad   : > { %v710_v16 = vpop.f32.mrf.mxu3 }
 0x3ae   : > { %v1533_v17 = vadd.f32 %v710_v16, %v1469_v43 }
 0x3b0   : > { %v722_v18 = vsel %vm336_vm0, %v1533_v17, -inf }
 0x3b1   : > { %723 = vmax.xlane.f32.xlu2 %v722_v18 }
 0x3bc   : > { %v540_v19 = vpop.xlane.xlu2 %539 }
 0x3bd   : > { %v550_v20 = vsub.f32 %v529_v49, %v540_v19  ;;  %586 = vrot.lane.b32.xlu0 %v1433_v23, %s1346_s16 }
 0x3bf   : > { %v554_v21 = vmul.f32 1.442695, %v550_v20 }
 0x3c1   : > { %1272 = vpow2.f32 %v554_v21 }
 0x3c4   : > { %v543_v22 = vpop.xlane.xlu1 %542 }
 0x3c5   : > { %v551_v24 = vsub.f32 %v531_v54, %v543_v22 }
 0x3c7   : > { %v1538_v25 = vpop.eup %1272  ;;  %v556_v27 = vmul.f32 1.442695, %v551_v24 }
 0x3c8   : > { %v562_v28 = vsel %vm336_vm0, %v1538_v25, 0.0 }
 0x3c9   : > { %1274 = vpow2.f32 %v556_v27  ;;  %563 = vadd.xlane.f32.xlu2 %v562_v28 }
 0x3cc   : > { %v546_v29 = vpop.xlane.xlu0 %545 }
 0x3cd   : > { %v552_v30 = vsub.f32 %v534_v57, %v546_v29  ;;  %v1551_v38 = vpop.f32.mrf.mxu1 }
 0x3cf   : > { %v1542_v32 = vpop.eup %1274  ;;  %v558_v33 = vmul.f32 1.442695, %v552_v30 }
 0x3d0   : > { %v565_v34 = vsel %vm336_vm0, %v1542_v32, 0.0 }
 0x3d1   : > { %1276 = vpow2.f32 %v558_v33  ;;  %566 = vadd.xlane.f32.xlu1 %v565_v34 }
 0x3d4   : > { %v549_v42 = vpop.xlane.xlu2 %548 }
 0x3d5   : > { %v1555_v40 = vpop.f32.mrf.mxu1  ;;  %v553_v45 = vsub.f32 %v536_v60, %v549_v42 }
 0x3d7   : > { %v1546_v36 = vpop.eup %1276  ;;  %v560_v48 = vmul.f32 1.442695, %v553_v45 }
 0x3d8   : > { %v568_v37 = vsel %vm336_vm0, %v1546_v36, 0.0 }
 0x3d9   : > { %569 = vadd.xlane.f32.xlu1 %v568_v37 }
 0x3e1   : > { %584 = vrot.lane.b32.xlu2 %v1436_v26, %s1346_s16 }
 0x3f2   : > { %761 = vrot.lane.b32.xlu1 %v1433_v23, %s1347_s17 }
 0x400   : > { %v1557_v41 = vpop.f32.mrf.mxu1 }
 0x408   : > { %v1559_v44 = vpop.f32.mrf.mxu1 }
 0x40c   : > { %v715_v46 = vpop.xlane.xlu1 %714 }
 0x40d   : > { %v725_v47 = vsub.f32 %v704_v7, %v715_v46 }
 0x40f   : > { %v729_v49 = vmul.f32 1.442695, %v725_v47 }
 0x410   : > { %v853_v50 = vpop.f32.mrf.mxu1 }
 0x411   : > { %1278 = vpow2.f32 %v729_v49  ;;  %v854_v51 = vadd.f32 %v853_v50, %v1448_v31 }
 0x412   : > { %1280 = vpow2.f32 %v560_v48 }
 0x413   : > { %v863_v52 = vsel %vm336_vm0, %v854_v51, -inf }
 0x414   : > { %v718_v53 = vpop.xlane.xlu0 %717  ;;  %864 = vmax.xlane.f32.xlu2 %v863_v52 }
 0x415   : > { %v726_v54 = vsub.f32 %v706_v10, %v718_v53 }
 0x417   : > { %v1563_v55 = vpop.eup %1278  ;;  %v731_v56 = vmul.f32 1.442695, %v726_v54 }
 0x418   : > { %v1565_v57 = vpop.eup %1280  ;;  %v855_v58 = vpop.f32.mrf.mxu1  ;;  %v737_v59 = vsel %vm336_vm0, %v1563_v55, 0.0 }
 0x419   : > { %738 = vadd.xlane.f32.xlu0 %v737_v59  ;;  %1282 = vpow2.f32 %v731_v56  ;;  %v571_v31 = vsel %vm336_vm0, %v1565_v57, 0.0  ;;  %v856_v63 = vadd.f32 %v855_v58, %v1455_v35 }
 0x41b   : > { %v866_v7 = vsel %vm336_vm0, %v856_v63, -inf }
 0x41c   : > { %572 = vadd.xlane.f32.xlu1 %v571_v31  ;;  %v721_v0 = vpop.xlane.xlu0 %720  ;;  %v371_v31 = vld [vmem:[%s1718_s3 + $0x4] sm:$0xf] }
 0x41f   : > { %v1571_v60 = vpop.eup %1282 }
 0x420   : > { %v858_v61 = vpop.f32.mrf.mxu1  ;;  %v740_v62 = vsel %vm336_vm0, %v1571_v60, 0.0 }
 0x421   : > { %v1583_v9 = vadd.f32 %v858_v61, %v1462_v39  ;;  %v625_v61 = vsel %vm623_vm2, %v371_v31, 0 }
 0x422   : > { %634 = vmatpush.bf16.msra.mxu2 %v625_v61 }
 0x423   : > { %v869_v35 = vsel %vm336_vm0, %v1583_v9, -inf }
 0x424   : > { %741 = vadd.xlane.f32.xlu1 %v740_v62  ;;  %v724_v11 = vpop.xlane.xlu2 %723 }
 0x425   : > { %v728_v20 = vsub.f32 %v1533_v17, %v724_v11 }
 0x428   : > { %v860_v1 = vpop.f32.mrf.mxu1 }
 0x429   : > { %v1577_v5 = vadd.f32 %v860_v1, %v1469_v43 }
 0x42b   : > { %v872_v8 = vsel %vm336_vm0, %v1577_v5, -inf }
 0x42c   : > { %867 = vmax.xlane.f32.xlu1 %v866_v7  ;;  %873 = vmax.xlane.f32.xlu0 %v872_v8 }
 0x42f   : > { %v587_v10 = vpop.permute.xlu0 %586 }
 0x430   : > { %602 = vmatpush.bf16.msrb.mxu0 %v587_v10 }
 0x434   : > { %870 = vmax.xlane.f32.xlu1 %v869_v35 }
 0x43c   : > { %v564_v12 = vpop.xlane.xlu2 %563 }
 0x43d   : > { %1284 = vrcp.f32 %v564_v12 }
 0x440   : > { %911 = vrot.lane.b32.xlu0 %v1433_v23, %s1348_s18  ;;  %v735_v23 = vmul.f32 1.442695, %v728_v20 }
 0x443   : > { %v1285_v15 = vpop.eup %1284 }
 0x444   : > { %v585_v43 = vpop.permute.xlu2 %584  ;;  %v567_v13 = vpop.xlane.xlu1 %566  ;;  %v578_v16 = vmul.f32 %v1285_v15, %v1538_v25 }
 0x445   : > { %1286 = vrcp.f32 %v567_v13  ;;  %603 = vmatpush.bf16.msrb.mxu0 %v585_v43 }
 0x446   : > { %1288 = vpow2.f32 %v735_v23 }
 0x44b   : > { %v1287_v39 = vpop.eup %1286 }
 0x44c   : > { %v579_v18 = vmul.f32 %v1287_v39, %v1542_v32  ;;  %v570_v21 = vpop.xlane.xlu1 %569  ;;  %v1595_v24 = vpop.eup %1288 }
 0x44d   : > { %759 = vrot.lane.b32.xlu1 %v1436_v26, %s1347_s17  ;;  %v746_v25 = vsel %vm336_vm0, %v1595_v24, 0.0 }
 0x44e   : > { %v582_v19 = vpack.c.bf16 %v579_v18, %v578_v16 }
 0x450   : > { %1203 = vmatmul.msk.bf16.vlgmr.msrb.gmra.mxu0 %vm336_vm0, %v582_v19  ;;  %v372_v19 = vld [vmem:[%s1718_s3 + $0x8] sm:$0xf] }
 0x451   : > { %v799_v23 = vsel %vm623_vm2, %v372_v19, 0 }
 0x452   : > { %808 = vmatpush.bf16.msrb.mxu2 %v799_v23 }
 0x464   : > { %v762_v22 = vpop.permute.xlu1 %761 }
 0x465   : > { %777 = vmatpush.bf16.msra.mxu0 %v762_v22 }
 0x46a   : > { %747 = vadd.xlane.f32.xlu0 %v746_v25 }
 0x487   : > { %v865_v27 = vpop.xlane.xlu2 %864 }
 0x488   : > { %v875_v28 = vsub.f32 %v854_v51, %v865_v27  ;;  %v727_v51 = vsub.f32 %v1528_v14, %v721_v0 }
 0x48a   : > { %v879_v29 = vmul.f32 1.442695, %v875_v28  ;;  %v733_v52 = vmul.f32 1.442695, %v727_v51 }
 0x48c   : > { %1290 = vpow2.f32 %v879_v29  ;;  %v739_v48 = vpop.xlane.xlu0 %738 }
 0x48d   : > { %1292 = vrcp.f32 %v570_v21 }
 0x48f   : > { %v573_v30 = vpop.xlane.xlu1 %572 }
 0x490   : > { %1294 = vrcp.f32 %v573_v30 }
 0x492   : > { %v1599_v32 = vpop.eup %1290 }
 0x493   : > { %v887_v17 = vsel %vm336_vm0, %v1599_v32, 0.0  ;;  %v1293_v33 = vpop.eup %1292 }
 0x494   : > { %888 = vadd.xlane.f32.xlu2 %v887_v17  ;;  %v580_v42 = vmul.f32 %v1293_v33, %v1546_v36 }
 0x496   : > { %v1295_v34 = vpop.eup %1294 }
 0x497   : > { %v742_v37 = vpop.xlane.xlu1 %741  ;;  %v581_v45 = vmul.f32 %v1295_v34, %v1565_v57 }
 0x499   : > { %v583_v46 = vpack.c.bf16 %v581_v45, %v580_v42 }
 0x49b   : > { %1204 = vmatmul.msk.bf16.gmra.mxu0 %vm336_vm0, %v583_v46 }
 0x49f   : > { %v868_v47 = vpop.xlane.xlu1 %867  ;;  %v874_v53 = vpop.xlane.xlu0 %873 }
 0x4a0   : > { %v876_v49 = vsub.f32 %v856_v63, %v868_v47  ;;  %v878_v56 = vsub.f32 %v1577_v5, %v874_v53 }
 0x4a2   : > { %v881_v50 = vmul.f32 1.442695, %v876_v49  ;;  %v885_v57 = vmul.f32 1.442695, %v878_v56 }
 0x4a4   : > { %1296 = vpow2.f32 %v881_v50 }
 0x4a5   : > { %1298 = vpow2.f32 %v733_v52 }
 0x4a6   : > { %1300 = vpow2.f32 %v885_v57 }
 0x4a7   : > { %1302 = vrcp.f32 %v742_v37 }
 0x4a8   : > { %1304 = vrcp.f32 %v739_v48 }
 0x4aa   : > { %v1297_v54 = vpop.eup %1296 }
 0x4ab   : > { %v890_v36 = vsel %vm336_vm0, %v1297_v54, 0.0  ;;  %v1299_v58 = vpop.eup %1298 }
 0x4ac   : > { %909 = vrot.lane.b32.xlu2 %v1436_v26, %s1348_s18  ;;  %891 = vadd.xlane.f32.xlu1 %v890_v36  ;;  %v743_v14 = vsel %vm336_vm0, %v1299_v58, 0.0  ;;  %v871_v26 = vpop.xlane.xlu1 %870  ;;  %v1301_v62 = vpop.eup %1300 }
 0x4ad   : > { %v1303_v63 = vpop.eup %1302  ;;  %v896_v1 = vsel %vm336_vm0, %v1301_v62, 0.0  ;;  %v877_v35 = vsub.f32 %v1583_v9, %v871_v26 }
 0x4ae   : > { %v1305_v0 = vpop.eup %1304  ;;  %v754_v5 = vmul.f32 %v1303_v63, %v1571_v60 }
 0x4af   : > { %v753_v7 = vmul.f32 %v1305_v0, %v1563_v55  ;;  %v883_v11 = vmul.f32 1.442695, %v877_v35 }
 0x4b1   : > { %v757_v10 = vpack.c.bf16 %v754_v5, %v753_v7  ;;  %1306 = vpow2.f32 %v883_v11 }
 0x4b2   : > { %v912_v59 = vpop.permute.xlu0 %911 }
 0x4b3   : > { %927 = vmatpush.bf16.msra.mxu3 %v912_v59 }
 0x4b4   : > { %744 = vadd.xlane.f32.xlu1 %v743_v14 }
 0x4b7   : > { %v1307_v43 = vpop.eup %1306 }
 0x4b8   : > { %v893_v13 = vsel %vm336_vm0, %v1307_v43, 0.0 }
 0x4bc   : > { %897 = vadd.xlane.f32.xlu1 %v896_v1 }
 0x4bf   : > { %v760_v8 = vpop.permute.xlu1 %759 }
 0x4c0   : > { %778 = vmatpush.bf16.msra.mxu0 %v760_v8 }
 0x4c3   : > { %1211 = vmatmul.msk.bf16.vlgmr.msra.gmra.mxu0 %vm336_vm0, %v757_v10  ;;  %v1253_v10 = vld [vmem:[%s1719_s4] ss:$0 sm:$0xff] }
 0x4cd   : > { %v605_v12 = vpop.f32.mrf.mxu0 }
 0x4d5   : > { %v607_v15 = vpop.f32.mrf.mxu0  ;;  %894 = vadd.xlane.f32.xlu2 %v893_v13 }
 0x4d6   : > { %v615_v39 = vpack.c.bf16 %v607_v15, %v605_v12 }
 0x4d8   : > { %1205 = vmatmul.msk.bf16.vlgmr.msra.gmra.mxu2 %vm388_vm1, %v615_v39 }
 0x4dd   : > { %v748_v21 = vpop.xlane.xlu0 %747 }
 0x507   : > { %v889_v60 = vpop.xlane.xlu2 %888 }
 0x508   : > { %1308 = vrcp.f32 %v889_v60 }
 0x50e   : > { %v1309_v22 = vpop.eup %1308 }
 0x50f   : > { %v910_v55 = vpop.permute.xlu2 %909  ;;  %v903_v27 = vmul.f32 %v1309_v22, %v1599_v32 }
 0x510   : > { %928 = vmatpush.bf16.msra.mxu3 %v910_v55 }
 0x518   : > { %v610_v16 = vpop.f32.mrf.mxu0 }
 0x51f   : > { %v892_v18 = vpop.xlane.xlu1 %891 }
 0x520   : > { %v612_v9 = vpop.f32.mrf.mxu0  ;;  %1310 = vrcp.f32 %v892_v18 }
 0x521   : > { %v616_v20 = vpack.c.bf16 %v612_v9, %v610_v16  ;;  %1312 = vrcp.f32 %v748_v21 }
 0x523   : > { %1206 = vmatmul.msk.bf16.gmra.mxu2 %vm388_vm1, %v616_v20 }
 0x526   : > { %v1311_v25 = vpop.eup %1310 }
 0x527   : > { %v904_v28 = vmul.f32 %v1311_v25, %v1297_v54  ;;  %v745_v29 = vpop.xlane.xlu1 %744  ;;  %v1313_v17 = vpop.eup %1312 }
 0x528   : > { %1314 = vrcp.f32 %v745_v29  ;;  %v756_v37 = vmul.f32 %v1313_v17, %v1595_v24  ;;  %v373_v24 = vld [vmem:[%s1718_s3 + $0xc] sm:$0xf] }
 0x529   : > { %v907_v30 = vpack.c.bf16 %v904_v28, %v903_v27  ;;  %v949_v54 = vsel %vm623_vm2, %v373_v24, 0 }
 0x52a   : > { %958 = vmatpush.bf16.msrb.mxu0 %v949_v54 }
 0x52b   : > { %1217 = vmatmul.msk.bf16.vlgmr.msra.gmra.mxu3 %vm336_vm0, %v907_v30 }
 0x52e   : > { %v1315_v33 = vpop.eup %1314 }
 0x52f   : > { %v755_v34 = vmul.f32 %v1315_v33, %v1299_v58  ;;  %v898_v46 = vpop.xlane.xlu1 %897 }
 0x530   : > { %1316 = vrcp.f32 %v898_v46 }
 0x531   : > { %v758_v42 = vpack.c.bf16 %v756_v37, %v755_v34  ;;  %v1349_v34 = vmov 32.0  }
 0x533   : > { %1212 = vmatmul.msk.bf16.gmra.mxu0 %vm336_vm0, %v758_v42 }
 0x536   : > { %v1317_v49 = vpop.eup %1316 }
 0x537   : > { %v906_v52 = vmul.f32 %v1317_v49, %v1301_v62 }
 0x540   : > { %v780_v45 = vpop.f32.mrf.mxu0 }
 0x548   : > { %v895_v47 = vpop.xlane.xlu2 %894  ;;  %v782_v48 = vpop.f32.mrf.mxu0 }
 0x549   : > { %1318 = vrcp.f32 %v895_v47  ;;  %v790_v32 = vpack.c.bf16 %v782_v48, %v780_v45 }
 0x54a   : > { %1320 = vrcp.f32 %v1349_v34 }
 0x54b   : > { %1213 = vmatmul.msk.bf16.vlgmr.msrb.gmra.mxu2 %vm388_vm1, %v790_v32 }
 0x54f   : > { %v1319_v50 = vpop.eup %1318 }
 0x550   : > { %v905_v51 = vmul.f32 %v1319_v50, %v1307_v43  ;;  %v1321_v37 = vpop.eup %1320 }
 0x551   : > { %v999_v42 = vmul.f32 32.0, %v1321_v37  ;;  %vm1003_vm3 = vweird.f32 %v1321_v37 }
 0x552   : > { %v908_v53 = vpack.c.bf16 %v906_v52, %v905_v51 }
 0x553   : > { %v1000_v45 = vsub.f32 1.0, %v999_v42 }
 0x554   : > { %1218 = vmatmul.msk.bf16.gmra.mxu3 %vm336_vm0, %v908_v53 }
 0x55b   : > { %v636_v62 = vpop.f32.mrf.mxu2 }
 0x55c   : > { %v665_v7 = vadd.f32 %v1551_v38, %v636_v62 }
 0x563   : > { %v638_v63 = vpop.f32.mrf.mxu2 }
 0x564   : > { %v667_v13 = vadd.f32 %v1555_v40, %v638_v63 }
 0x5a6   : > { %v641_v0 = vpop.f32.mrf.mxu2 }
 0x5a7   : > { %v670_v20 = vadd.f32 %v1557_v41, %v641_v0 }
 0x5ae   : > { %v930_v56 = vpop.f32.mrf.mxu3  ;;  %v643_v1 = vpop.f32.mrf.mxu2 }
 0x5af   : > { %v672_v25 = vadd.f32 %v1559_v44, %v643_v1  ;;  %v1001_v44 = vmul.f32 %v1321_v37, %v1000_v45 }
 0x5b0   : > { %v785_v36 = vpop.f32.mrf.mxu0 }
 0x5b1   : > { %v1002_v46 = vadd.f32 %v1321_v37, %v1001_v44 }
 0x5b6   : > { %v932_v57 = vpop.f32.mrf.mxu3 }
 0x5b7   : > { %v940_v58 = vpack.c.bf16 %v932_v57, %v930_v56 }
 0x5b8   : > { %v787_v59 = vpop.f32.mrf.mxu0 }
 0x5b9   : > { %v791_v14 = vpack.c.bf16 %v787_v59, %v785_v36  ;;  %1219 = vmatmul.msk.bf16.vlgmr.msrb.gmra.mxu0 %vm388_vm1, %v940_v58 }
 0x5bb   : > { %1214 = vmatmul.msk.bf16.gmra.mxu2 %vm388_vm1, %v791_v14 }
 0x5ce   : > { %v810_v5 = vpop.f32.mrf.mxu2 }
 0x5cf   : > { %v820_v8 = vadd.f32 %v810_v5, %v665_v7 }
 0x5d6   : > { %v812_v43 = vpop.f32.mrf.mxu2 }
 0x5d7   : > { %v935_v31 = vpop.f32.mrf.mxu3  ;;  %v821_v39 = vadd.f32 %v812_v43, %v667_v13 }
 0x5df   : > { %v937_v61 = vpop.f32.mrf.mxu3 }
 0x5e0   : > { %v941_v26 = vpack.c.bf16 %v937_v61, %v935_v31 }
 0x5e2   : > { %1220 = vmatmul.msk.bf16.gmra.mxu0 %vm388_vm1, %v941_v26 }
 0x636   : > { %v960_v35 = vpop.f32.mrf.mxu0 }
 0x637   : > { %v970_v11 = vadd.f32 %v960_v35, %v820_v8 }
 0x639   : > { %v978_v12 = vadd.f32 %v1253_v10, %v970_v11 }
 0x63b   : > { %v982_v15 = vadd.f32 %v978_v12, %v1420_v4 }
 0x63d   : > { %v986_v60 = vsel %vm336_vm0, %v982_v15, 0.0 }
 0x63e   : > { %987 = vadd.xlane.f32.xlu1 %v986_v60  ;;  %v962_v55 = vpop.f32.mrf.mxu0  ;;  %v815_v19 = vpop.f32.mrf.mxu2 }
 0x63f   : > { %v971_v16 = vadd.f32 %v962_v55, %v821_v39  ;;  %v822_v23 = vadd.f32 %v815_v19, %v670_v20  ;;  %v1679_v39 = vld [vmem:[%s1720_s5] ss:$0 sm:$0xff] }
 0x641   : > { %v979_v38 = vadd.f32 %v1253_v10, %v971_v16  ;;  %v1684_v16 = vld [vmem:[%s1721_s6] ss:$0 sm:$0xff] }
 0x643   : > { %v983_v18 = vadd.f32 %v979_v38, %v1424_v6 }
 0x645   : > { %v989_v9 = vsel %vm336_vm0, %v983_v18, 0.0 }
 0x646   : > { %990 = vadd.xlane.f32.xlu0 %v989_v9  ;;  %v817_v4 = vpop.f32.mrf.mxu2 }
 0x647   : > { %v823_v28 = vadd.f32 %v817_v4, %v672_v25  ;;  %v1350_v4 = vmov 0.0  }
 0x65f   : > { %v965_v21 = vpop.f32.mrf.mxu0 }
 0x660   : > { %v972_v40 = vadd.f32 %v965_v21, %v822_v23 }
 0x662   : > { %v980_v22 = vadd.f32 %v1253_v10, %v972_v40 }
 0x664   : > { %v984_v27 = vadd.f32 %v980_v22, %v1416_v2  ;;  %v1656_v2 = vsel %vm1003_vm3, %v1321_v37, %v1002_v46 }
 0x666   : > { %v992_v29 = vsel %vm336_vm0, %v984_v27, 0.0 }
 0x667   : > { %993 = vadd.xlane.f32.xlu1 %v992_v29  ;;  %v967_v6 = vpop.f32.mrf.mxu0 }
 0x668   : > { %v973_v30 = vadd.f32 %v967_v6, %v823_v28 }
 0x66a   : > { %v981_v17 = vadd.f32 %v1253_v10, %v973_v30 }
 0x66c   : > { %v985_v33 = vadd.f32 %v981_v17, %v1418_v3 }
 0x66e   : > { %v995_v41 = vsel %vm336_vm0, %v985_v33, 0.0 }
 0x66f   : > { %996 = vadd.xlane.f32.xlu0 %v995_v41 }
 0x6b1   : > { %v988_v47 = vpop.xlane.xlu1 %987 }
 0x6b2   : > { %v1005_v48 = vmul.f32 %v1656_v2, %v988_v47 }
 0x6b4   : > { %v1009_v32 = vsub.f32 %v982_v15, %v1005_v48 }
 0x6b6   : > { %v1013_v49 = vmul.f32 %v1009_v32, %v1009_v32 }
 0x6b8   : > { %v1017_v3 = vsel %vm336_vm0, %v1013_v49, 0.0 }
 0x6b9   : > { %v991_v50 = vpop.xlane.xlu0 %990  ;;  %1018 = vadd.xlane.f32.xlu2 %v1017_v3 }
 0x6ba   : > { %v1006_v51 = vmul.f32 %v1656_v2, %v991_v50 }
 0x6bc   : > { %v1010_v52 = vsub.f32 %v983_v18, %v1006_v51 }
 0x6be   : > { %v1014_v53 = vmul.f32 %v1010_v52, %v1010_v52 }
 0x6c0   : > { %v1020_v24 = vsel %vm336_vm0, %v1014_v53, 0.0 }
 0x6c1   : > { %1021 = vadd.xlane.f32.xlu1 %v1020_v24 }
 0x6da   : > { %v994_v54 = vpop.xlane.xlu1 %993 }
 0x6db   : > { %v1007_v56 = vmul.f32 %v1656_v2, %v994_v54 }
 0x6dd   : > { %v1663_v36 = vsub.f32 %v984_v27, %v1007_v56 }
 0x6df   : > { %v1015_v57 = vmul.f32 %v1663_v36, %v1663_v36 }
 0x6e1   : > { %v1023_v58 = vsel %vm336_vm0, %v1015_v57, 0.0 }
 0x6e2   : > { %v997_v59 = vpop.xlane.xlu0 %996  ;;  %1024 = vadd.xlane.f32.xlu0 %v1023_v58 }
 0x6e3   : > { %v1008_v14 = vmul.f32 %v1656_v2, %v997_v59 }
 0x6e5   : > { %v1669_v31 = vsub.f32 %v985_v33, %v1008_v14 }
 0x6e7   : > { %v1016_v61 = vmul.f32 %v1669_v31, %v1669_v31 }
 0x6e9   : > { %v1026_v26 = vsel %vm336_vm0, %v1016_v61, 0.0 }
 0x6ea   : > { %1027 = vadd.xlane.f32.xlu2 %v1026_v26 }
 0x72c   : > { %v1019_v62 = vpop.xlane.xlu2 %1018 }
 0x72d   : > { %v1029_v63 = vmul.f32 %v1019_v62, %v1656_v2 }
 0x72f   : > { %v1033_v0 = vadd.f32 1e-05, %v1029_v63 }
 0x731   : > { %1322 = vrsqrt.f32 %v1033_v0  ;;  %vm1043_vm5 = vweird.f32 %v1033_v0 }
 0x734   : > { %v1022_v1 = vpop.xlane.xlu1 %1021 }
 0x735   : > { %v1030_v5 = vmul.f32 %v1022_v1, %v1656_v2 }
 0x737   : > { %v1323_v7 = vpop.eup %1322  ;;  %v1034_v8 = vadd.f32 1e-05, %v1030_v5 }
 0x738   : > { %v1038_v10 = vmul.f32 %v1323_v7, %v1033_v0  ;;  %vm1044_vm4 = vweird.f32 %v1323_v7 }
 0x739   : > { %1324 = vrsqrt.f32 %v1034_v8  ;;  %vm1045_vm6 = vmor %vm1043_vm5, %vm1044_vm4  ;;  %vm1053_vm8 = vweird.f32 %v1034_v8 }
 0x73a   : > { %v1039_v35 = vmul.f32 %v1323_v7, %v1038_v10 }
 0x73c   : > { %v1040_v11 = vmul.f32 0.5, %v1039_v35 }
 0x73e   : > { %v1041_v12 = vsub.f32 1.5, %v1040_v11 }
 0x73f   : > { %v1325_v43 = vpop.eup %1324 }
 0x740   : > { %v1042_v13 = vmul.f32 %v1323_v7, %v1041_v12  ;;  %v1048_v15 = vmul.f32 %v1325_v43, %v1034_v8  ;;  %vm1054_vm7 = vweird.f32 %v1325_v43 }
 0x741   : > { %vm1055_vm9 = vmor %vm1053_vm8, %vm1054_vm7 }
 0x742   : > { %v1046_v60 = vsel %vm1045_vm6, %v1323_v7, %v1042_v13  ;;  %v1049_v55 = vmul.f32 %v1325_v43, %v1048_v15 }
 0x743   : > { %v1077_v38 = vmul.f32 %v1046_v60, %v1009_v32 }
 0x744   : > { %v1050_v18 = vmul.f32 0.5, %v1049_v55 }
 0x745   : > { %v1085_v9 = vmul.f32 %v1679_v39, %v1077_v38 }
 0x746   : > { %v1051_v19 = vsub.f32 1.5, %v1050_v18 }
 0x747   : > { %v1093_v20 = vadd.f32 %v1684_v16, %v1085_v9 }
 0x748   : > { %v1052_v23 = vmul.f32 %v1325_v43, %v1051_v19 }
 0x749   : > { %v1097_v21 = vmul.f32 0.5, %v1093_v20 }
 0x74a   : > { %v1056_v40 = vsel %vm1055_vm9, %v1325_v43, %v1052_v23 }
 0x74b   : > { %vm1101_vm10 = vcmp.ge.f32.partialorder %v1097_v21, 1.0  ;;  %v1078_v22 = vmul.f32 %v1056_v40, %v1010_v52 }
 0x74c   : > { %v1221_v25 = vsel %vm1101_vm10, 1.0, %v1350_v4 }
 0x74d   : > { %v1113_v27 = vpack.c.bf16 %v1221_v25, %v1221_v25  ;;  %v1086_v28 = vmul.f32 %v1679_v39, %v1078_v22 }
 0x74f   : > { %1118 = vst.msk [vmem:[%s1692_s14] sm:$0xf] %vm1117_vm11, %v1113_v27  ;;  %v1094_v29 = vadd.f32 %v1684_v16, %v1086_v28 }
 0x751   : > { %v1098_v6 = vmul.f32 0.5, %v1094_v29 }
 0x753   : > { %vm1102_vm12 = vcmp.ge.f32.partialorder %v1098_v6, 1.0 }
 0x754   : > { %v1222_v30 = vsel %vm1102_vm12, 1.0, %v1350_v4 }
 0x755   : > { %v1025_v17 = vpop.xlane.xlu0 %1024  ;;  %v1114_v33 = vpack.c.bf16 %v1222_v30, %v1222_v30 }
 0x756   : > { %v1031_v41 = vmul.f32 %v1025_v17, %v1656_v2 }
 0x757   : > { %1119 = vst.msk [vmem:[%s1692_s14 + $0x4] sm:$0xf] %vm1117_vm11, %v1114_v33 }
 0x758   : > { %v1035_v34 = vadd.f32 1e-05, %v1031_v41 }
 0x75a   : > { %1326 = vrsqrt.f32 %v1035_v34  ;;  %vm1063_vm14 = vweird.f32 %v1035_v34 }
 0x75d   : > { %v1028_v37 = vpop.xlane.xlu2 %1027 }
 0x75e   : > { %v1032_v42 = vmul.f32 %v1028_v37, %v1656_v2 }
 0x760   : > { %v1327_v45 = vpop.eup %1326  ;;  %v1036_v44 = vadd.f32 1e-05, %v1032_v42 }
 0x761   : > { %v1058_v46 = vmul.f32 %v1327_v45, %v1035_v34  ;;  %vm1064_vm13 = vweird.f32 %v1327_v45 }
 0x762   : > { %1328 = vrsqrt.f32 %v1036_v44  ;;  %vm1065_vm15 = vmor %vm1063_vm14, %vm1064_vm13  ;;  %vm1073_vm1 = vweird.f32 %v1036_v44 }
 0x763   : > { %v1059_v47 = vmul.f32 %v1327_v45, %v1058_v46 }
 0x765   : > { %v1060_v48 = vmul.f32 0.5, %v1059_v47 }
 0x767   : > { %v1061_v32 = vsub.f32 1.5, %v1060_v48 }
 0x768   : > { %v1329_v49 = vpop.eup %1328 }
 0x769   : > { %v1062_v3 = vmul.f32 %v1327_v45, %v1061_v32  ;;  %v1068_v50 = vmul.f32 %v1329_v49, %v1036_v44  ;;  %vm1074_vm0 = vweird.f32 %v1329_v49 }
 0x76a   : > { %vm1075_vm2 = vmor %vm1073_vm1, %vm1074_vm0 }
 0x76b   : > { %v1066_v51 = vsel %vm1065_vm15, %v1327_v45, %v1062_v3  ;;  %v1069_v52 = vmul.f32 %v1329_v49, %v1068_v50 }
 0x76c   : > { %v1079_v53 = vmul.f32 %v1066_v51, %v1663_v36 }
 0x76d   : > { %v1070_v24 = vmul.f32 0.5, %v1069_v52 }
 0x76e   : > { %v1087_v2 = vmul.f32 %v1679_v39, %v1079_v53 }
 0x76f   : > { %v1071_v54 = vsub.f32 1.5, %v1070_v24 }
 0x770   : > { %v1095_v56 = vadd.f32 %v1684_v16, %v1087_v2 }
 0x771   : > { %v1072_v57 = vmul.f32 %v1329_v49, %v1071_v54 }
 0x772   : > { %v1099_v58 = vmul.f32 0.5, %v1095_v56 }
 0x773   : > { %v1076_v59 = vsel %vm1075_vm2, %v1329_v49, %v1072_v57 }
 0x774   : > { %vm1103_vm3 = vcmp.ge.f32.partialorder %v1099_v58, 1.0  ;;  %v1080_v14 = vmul.f32 %v1076_v59, %v1669_v31 }
 0x775   : > { %v1223_v61 = vsel %vm1103_vm3, 1.0, %v1350_v4 }
 0x776   : > { %v1115_v26 = vpack.c.bf16 %v1223_v61, %v1223_v61  ;;  %v1088_v36 = vmul.f32 %v1679_v39, %v1080_v14 }
 0x778   : > { %1120 = vst.msk [vmem:[%s1692_s14 + $0x8] sm:$0xf] %vm1117_vm11, %v1115_v26  ;;  %v1096_v62 = vadd.f32 %v1684_v16, %v1088_v36 }
 0x77a   : > { %v1100_v63 = vmul.f32 0.5, %v1096_v62 }
 0x77c   : > { %vm1104_vm4 = vcmp.ge.f32.partialorder %v1100_v63, 1.0 }
 0x77d   : > { %v1224_v0 = vsel %vm1104_vm4, 1.0, %v1350_v4 }
 0x77e   : > { %v1116_v1 = vpack.c.bf16 %v1224_v0, %v1224_v0 }
 0x780   : > { %1121 = vst.msk [vmem:[%s1692_s14 + $0xc] sm:$0xf] %vm1117_vm11, %v1116_v1 }
 0x781 PF: > { %s18_s27 = sadd.s32 1, %s1336_s27  }
 0x782   : > { %p15_p4 = scmp.ge.s32.totalorder %s18_s27, 6  }
 0x784   :  { %17 = sbr.rel (!%p15_p4) target bundleno = 1 (0x1), region = 82 }

</bundles_post_ra>
